<compile_context>
chip_gen: v7x
topology: tpu7x:2x2x1
jax: 0.10.0
libtpu: 0.0.40
codegen_flags: <defaults>
</compile_context>

<pallas_src>
import functools

import jax
import jax.numpy as jnp
from jax.experimental import pallas as pl
from jax.experimental.pallas import tpu as pltpu


_HIDDEN_DIMS = (64, 32, 8)  # matches nn.Linear(state,64)->64,32->32,8->8,action


def _round_up(n, m):
    return (n + m - 1) // m * m


def _dqn_kernel(layout, x_ref, p_ref, o_ref):
    """Fused 4-layer MLP: (Linear + ReLU) x3 -> Linear, for one batch tile.

    `layout` is a static tuple of (w_row, b_row, in_dim, out_dim) giving the
    row offsets of each layer's weight / bias inside the packed param slab.
    """
    h = x_ref[...]
    n_layers = len(layout)
    for li, (w_row, b_row, fin, fout) in enumerate(layout):
        w = p_ref[w_row:w_row + fin, 0:fout]       # static slice -> no copy DMA
        b = p_ref[b_row:b_row + 1, 0:fout]         # (1, fout) broadcasts over batch
        h = jnp.dot(h, w, preferred_element_type=jnp.float32) + b
        if li < n_layers - 1:
            h = jnp.maximum(h, 0.0)
    o_ref[...] = h.astype(o_ref.dtype)


def make_layout(state_size, action_size):
    """Row layout of the packed parameter slab (all segment starts 8-aligned)."""
    dims = (state_size,) + _HIDDEN_DIMS + (action_size,)
    layout = []
    row = 0
    for i in range(len(dims) - 1):
        fin, fout = dims[i], dims[i + 1]
        w_row = row
        row = _round_up(row + fin, 8)
        b_row = row
        row = _round_up(row + 1, 8)
        layout.append((w_row, b_row, fin, fout))
    total_rows = _round_up(row, 8)
    max_out = max(dims[1:])
    return tuple(layout), total_rows, max_out


def pack_params(params, state_size, action_size):
    """Pack w1..w4 / b1..b4 into a single (rows, max_out) f32 slab."""
    layout, rows, cols = make_layout(state_size, action_size)
    slab = jnp.zeros((rows, cols), jnp.float32)
    for i, (w_row, b_row, fin, fout) in enumerate(layout):
        slab = slab.at[w_row:w_row + fin, 0:fout].set(params[f"w{i+1}"])
        slab = slab.at[b_row:b_row + 1, 0:fout].set(params[f"b{i+1}"])
    return slab, layout


@functools.partial(jax.jit, static_argnames=("layout", "action_size", "tile_b"))
def dqn_forward(x, slab, *, layout, action_size, tile_b=512):
    """x: (B, state_size) f32; slab: packed params; returns (B, action_size)."""
    B, state_size = x.shape
    tile_b = _round_up(min(tile_b, _round_up(B, 8)), 8)   # multiple of 8, <= 512
    b_pad = _round_up(B, tile_b)
    if b_pad != B:
        x = jnp.pad(x, ((0, b_pad - B), (0, 0)))
    rows, cols = slab.shape

    out = pl.pallas_call(
        functools.partial(_dqn_kernel, layout),
        out_shape=jax.ShapeDtypeStruct((b_pad, action_size), jnp.float32),
        grid=(pl.cdiv(b_pad, tile_b),),
        in_specs=[
            # activations: block over batch
            pl.BlockSpec((tile_b, state_size), lambda i: (i, 0)),
            # packed params: constant block index -> stays VMEM-resident
            pl.BlockSpec((rows, cols), lambda i: (0, 0)),
        ],
        out_specs=pl.BlockSpec((tile_b, action_size), lambda i: (i, 0)),
        compiler_params=pltpu.CompilerParams(
            dimension_semantics=("parallel",)),
    )(x, slab)
    return out[:B]


def init_dqn_params(key, state_size, action_size):
    """PyTorch nn.Linear default init: U(-1/sqrt(fan_in), 1/sqrt(fan_in))."""
    dims = (state_size,) + _HIDDEN_DIMS + (action_size,)
    params = {}
    for i in range(len(dims) - 1):
        fan_in, fan_out = dims[i], dims[i + 1]
        key, kw, kb = jax.random.split(key, 3)
        bound = 1.0 / jnp.sqrt(jnp.float32(fan_in))
        # stored (in_features, out_features) so the kernel does x @ W + b
        params[f"w{i+1}"] = jax.random.uniform(
            kw, (fan_in, fan_out), jnp.float32, minval=-bound, maxval=bound)
        params[f"b{i+1}"] = jax.random.uniform(
            kb, (1, fan_out), jnp.float32, minval=-bound, maxval=bound)
    return params


def _reference_forward(x, params):
    h = jnp.maximum(x @ params["w1"] + params["b1"], 0.0)
    h = jnp.maximum(h @ params["w2"] + params["b2"], 0.0)
    h = jnp.maximum(h @ params["w3"] + params["b3"], 0.0)
    return h @ params["w4"] + params["b4"]


if __name__ == "__main__":
    key = jax.random.PRNGKey(0)
    k_params, k_x = jax.random.split(key)

    state_size, action_size, batch = 8, 4, 8
    params = init_dqn_params(k_params, state_size, action_size)
    slab, layout = pack_params(params, state_size, action_size)

    x = jax.random.normal(k_x, (batch, state_size), jnp.float32)
    out = dqn_forward(x, slab, layout=layout, action_size=action_size)
    jax.block_until_ready(out)

    ref = _reference_forward(x, params)
    assert out.shape == (batch, action_size)
    assert jnp.allclose(out, ref, atol=1e-5, rtol=1e-5), "mismatch vs reference"

    # Exercise the multi-step batch grid + ragged batch path (grid=(3,)).
    x2 = jax.random.normal(jax.random.PRNGKey(1), (20, state_size), jnp.float32)
    out2 = dqn_forward(x2, slab, layout=layout, action_size=action_size, tile_b=8)
    jax.block_until_ready(out2)
    ref2 = _reference_forward(x2, params)
    assert out2.shape == (20, action_size)
    assert jnp.allclose(out2, ref2, atol=1e-5, rtol=1e-5), "mismatch (ragged batch)"

    print("KERNEL_OK")
</pallas_src>

<mosaic_0001>
module attributes {stable_mosaic.version = 11 : i64} {
  func.func @_dqn_kernel(%arg0: i32, %arg1: memref<8x8xf32, #tpu.memory_space<vmem>>, %arg2: memref<144x64xf32, #tpu.memory_space<vmem>>, %arg3: memref<8x4xf32, #tpu.memory_space<vmem>>) attributes {dimension_semantics = [#tpu.dimension_semantics<parallel>], iteration_bounds = array<i64: 1>, scalar_prefetch = 0 : i64, scratch_operands = 0 : i64, tpu.core_type = #tpu.core_type<tc>, window_params = [{transform_indices = @transform_0, window_bounds = array<i64: 8, 8>}, {pipeline_mode = #tpu.pipeline_mode<synchronous>, transform_indices = @transform_1, window_bounds = array<i64: 144, 64>}, {transform_indices = @transform_2, window_bounds = array<i64: 8, 4>}]} {
    %c0 = arith.constant 0 : index
    %c0_0 = arith.constant 0 : index
    %0 = vector.load %arg1[%c0, %c0_0] : memref<8x8xf32, #tpu.memory_space<vmem>>, vector<8x8xf32>
    %c0_1 = arith.constant 0 : index
    %c0_2 = arith.constant 0 : index
    %1 = vector.load %arg2[%c0_1, %c0_2] : memref<144x64xf32, #tpu.memory_space<vmem>>, vector<8x64xf32>
    %c8 = arith.constant 8 : index
    %c0_3 = arith.constant 0 : index
    %2 = vector.load %arg2[%c8, %c0_3] : memref<144x64xf32, #tpu.memory_space<vmem>>, vector<1x64xf32>
    %cst = arith.constant dense<0.000000e+00> : vector<8x64xf32>
    %3 = tpu.matmul %0, %1, %cst {dimension_numbers = #tpu.dot_dimension_numbers<[1], [0], [0], [1], [0, 0, 1, 1], [], []>} : vector<8x8xf32>, vector<8x64xf32>, vector<8x64xf32> -> vector<8x64xf32>
    %4 = vector.broadcast %2 : vector<1x64xf32> to vector<8x64xf32>
    %5 = arith.addf %3, %4 : vector<8x64xf32>
    %cst_4 = arith.constant 0.000000e+00 : f32
    %6 = vector.broadcast %cst_4 : f32 to vector<8x64xf32>
    %7 = arith.maximumf %5, %6 : vector<8x64xf32>
    %c16 = arith.constant 16 : index
    %c0_5 = arith.constant 0 : index
    %8 = vector.load %arg2[%c16, %c0_5] : memref<144x64xf32, #tpu.memory_space<vmem>>, vector<64x32xf32>
    %c80 = arith.constant 80 : index
    %c0_6 = arith.constant 0 : index
    %9 = vector.load %arg2[%c80, %c0_6] : memref<144x64xf32, #tpu.memory_space<vmem>>, vector<1x32xf32>
    %cst_7 = arith.constant dense<0.000000e+00> : vector<8x32xf32>
    %10 = tpu.matmul %7, %8, %cst_7 {dimension_numbers = #tpu.dot_dimension_numbers<[1], [0], [0], [1], [0, 0, 1, 1], [], []>} : vector<8x64xf32>, vector<64x32xf32>, vector<8x32xf32> -> vector<8x32xf32>
    %11 = vector.broadcast %9 : vector<1x32xf32> to vector<8x32xf32>
    %12 = arith.addf %10, %11 : vector<8x32xf32>
    %cst_8 = arith.constant 0.000000e+00 : f32
    %13 = vector.broadcast %cst_8 : f32 to vector<8x32xf32>
    %14 = arith.maximumf %12, %13 : vector<8x32xf32>
    %c88 = arith.constant 88 : index
    %c0_9 = arith.constant 0 : index
    %15 = vector.load %arg2[%c88, %c0_9] : memref<144x64xf32, #tpu.memory_space<vmem>>, vector<32x8xf32>
    %c120 = arith.constant 120 : index
    %c0_10 = arith.constant 0 : index
    %16 = vector.load %arg2[%c120, %c0_10] : memref<144x64xf32, #tpu.memory_space<vmem>>, vector<1x8xf32>
    %cst_11 = arith.constant dense<0.000000e+00> : vector<8x8xf32>
    %17 = tpu.matmul %14, %15, %cst_11 {dimension_numbers = #tpu.dot_dimension_numbers<[1], [0], [0], [1], [0, 0, 1, 1], [], []>} : vector<8x32xf32>, vector<32x8xf32>, vector<8x8xf32> -> vector<8x8xf32>
    %18 = vector.broadcast %16 : vector<1x8xf32> to vector<8x8xf32>
    %19 = arith.addf %17, %18 : vector<8x8xf32>
    %cst_12 = arith.constant 0.000000e+00 : f32
    %20 = vector.broadcast %cst_12 : f32 to vector<8x8xf32>
    %21 = arith.maximumf %19, %20 : vector<8x8xf32>
    %c128 = arith.constant 128 : index
    %c0_13 = arith.constant 0 : index
    %22 = vector.load %arg2[%c128, %c0_13] : memref<144x64xf32, #tpu.memory_space<vmem>>, vector<8x4xf32>
    %c136 = arith.constant 136 : index
    %c0_14 = arith.constant 0 : index
    %23 = vector.load %arg2[%c136, %c0_14] : memref<144x64xf32, #tpu.memory_space<vmem>>, vector<1x4xf32>
    %cst_15 = arith.constant dense<0.000000e+00> : vector<8x4xf32>
    %24 = tpu.matmul %21, %22, %cst_15 {dimension_numbers = #tpu.dot_dimension_numbers<[1], [0], [0], [1], [0, 0, 1, 1], [], []>} : vector<8x8xf32>, vector<8x4xf32>, vector<8x4xf32> -> vector<8x4xf32>
    %25 = vector.broadcast %23 : vector<1x4xf32> to vector<8x4xf32>
    %26 = arith.addf %24, %25 : vector<8x4xf32>
    %c0_16 = arith.constant 0 : index
    %c0_17 = arith.constant 0 : index
    %27 = vector.load %arg3[%c0_16, %c0_17] : memref<8x4xf32, #tpu.memory_space<vmem>>, vector<8x4xf32>
    tpu.vector_store %arg3[%c0_16, %c0_17], %26 {strides = array<i32>} : memref<8x4xf32, #tpu.memory_space<vmem>>, vector<8x4xf32>,
    return
  }
  func.func @transform_0(%arg0: i32) -> (i32, i32) {
    %c0_i32 = arith.constant 0 : i32
    %c0_i32_0 = arith.constant 0 : i32
    return %arg0, %c0_i32 : i32, i32
  }
  func.func @transform_1(%arg0: i32) -> (i32, i32) {
    %c0_i32 = arith.constant 0 : i32
    %c0_i32_0 = arith.constant 0 : i32
    %c0_i32_1 = arith.constant 0 : i32
    return %c0_i32, %c0_i32_0 : i32, i32
  }
  func.func @transform_2(%arg0: i32) -> (i32, i32) {
    %c0_i32 = arith.constant 0 : i32
    %c0_i32_0 = arith.constant 0 : i32
    return %arg0, %c0_i32 : i32, i32
  }
}

</mosaic_0001>

<bundles_post_ra>
// kernel: dqn_forward.1
= control target key start
LH: loop header
LB: loop body
LE: loop exit
PB: predicated region body
PF: predicated region fallthrough
CT: control target
= control target key end

     0   :  { %vm18_vm0 = vcmask 64512   ;;  %v437_v0 = vmov 0.0   ;;  %vm438_vm1 = vmmov 0   ;;  %v439_v4 = vmov 0.0|0.0   ;;  %s521_s1 = inlined_call_operand.vmem [shape: f32[144,64], index: 1, kind: input, shape index: {}]   ;;  %s522_s0 = inlined_call_operand.vmem [shape: f32[8,8], index: 0, kind: input, shape index: {}]   ;;  %s523_s2 = inlined_call_operand.vmem [shape: f32[8,4], index: 2, kind: output, shape index: {}]  }
   0x1   :  { %376 = vmatprep.subr.mxu0 %v437_v0  ;;  %v12_v1 = vld [vmem:[%s521_s1] sm:$0xff]  ;;  %378 = vmatprep.mubr.msk.f32.mxu0 %vm438_vm1, %v437_v0  ;;  %v93_v3 = vld [vmem:[%s521_s1 + $0x10] sm:$0xff]  ;;  %v94_v5 = vld [vmem:[%s521_s1 + $0x18] sm:$0xff]  ;;  %vm106_vm2 = vcmask 523264   ;;  %vm190_vm3 = vcmask 261120   ;;  %vm344_vm4 = vcmask 31744  }
   0x2   :  { %v11_v2 = vld [vmem:[%s522_s0] sm:$0xff]  ;;  %377 = vmatpush3.msra.mxu0 %v12_v1  ;;  %416 = vmatprep.subr.bf16.mxu1 %v439_v4  ;;  %v96_v7 = vld [vmem:[%s521_s1 + $0x28] sm:$0xff]  ;;  %v417_v8 = vpack.c.bf16 %v94_v5, %v93_v3  ;;  %v97_v10 = vld [vmem:[%s521_s1 + $0x30] sm:$0xff] }
   0x3   :  { %v95_v6 = vld [vmem:[%s521_s1 + $0x20] sm:$0xff]  ;;  %379 = vmatmul.mubr.msk.f32.vlgmr.msra.gmra.mrb[0].mxu0 %vm18_vm0, %v11_v2  ;;  %397 = vmatprep.mubr.msk.f32.mxu1 %vm438_vm1, %v437_v0  ;;  %v98_v11 = vld [vmem:[%s521_s1 + $0x38] sm:$0xff]  ;;  %v100_v14 = vld [vmem:[%s521_s1 + $0x48] sm:$0xff] }
   0x4   :  { %428 = vmatprep.subr.bf16.mxu0 %v439_v4  ;;  %408 = vmatprep.mubr.msk.f32.mxu0 %vm438_vm1, %v437_v0  ;;  %v420_v9 = vpack.c.bf16 %v96_v7, %v95_v6  ;;  %v423_v12 = vpack.c.bf16 %v98_v11, %v97_v10  ;;  %v99_v13 = vld [vmem:[%s521_s1 + $0x40] sm:$0xff]  ;;  %v181_v16 = vld [vmem:[%s521_s1 + $0x58] sm:$0xff]  ;;  %v350_v19 = vld [vmem:[%s521_s1 + $0x8] ss:$0 sm:$0xff] }
   0x5   :  { %418 = vmatpush3.bf16.msra.mxu1 %v417_v8  ;;  %v426_v15 = vpack.c.bf16 %v100_v14, %v99_v13  ;;  %v182_v17 = vld [vmem:[%s521_s1 + $0x60] sm:$0xff]  ;;  %v183_v24 = vld [vmem:[%s521_s1 + $0x68] sm:$0xff]  ;;  %v184_v25 = vld [vmem:[%s521_s1 + $0x70] sm:$0xff] }
   0x6   :  { %419 = vmatprep.subr.bf16.mxu1 %v439_v4  ;;  %v429_v18 = vpack.c.bf16 %v182_v17, %v181_v16  ;;  %v432_v26 = vpack.c.bf16 %v184_v25, %v183_v24  ;;  %v352_v27 = vld [vmem:[%s521_s1 + $0x50] ss:$0 sm:$0xff]  ;;  %v265_v32 = vld [vmem:[%s521_s1 + $0x80] sm:$0xff]  ;;  %v354_v33 = vld [vmem:[%s521_s1 + $0x78] ss:$0 sm:$0xff] }
   0x7   :  { %v356_v38 = vld [vmem:[%s521_s1 + $0x88] ss:$0 sm:$0xff] }
   0x8   :  { %430 = vmatpush3.bf16.msra.mxu0 %v429_v18 }
   0x9   :  { %421 = vmatpush3.bf16.msra.mxu1 %v420_v9  ;;  %431 = vmatprep.subr.bf16.mxu0 %v439_v4 }
   0xa   :  { %422 = vmatprep.subr.bf16.mxu1 %v439_v4 }
   0xc   :  { %433 = vmatpush3.bf16.msra.mxu0 %v432_v26 }
   0xd   :  { %424 = vmatpush3.bf16.msra.mxu1 %v423_v12  ;;  %411 = vmatprep.subr.mxu0 %v437_v0 }
   0xe   :  { %425 = vmatprep.subr.bf16.mxu1 %v439_v4 }
  0x11   :  { %427 = vmatpush3.bf16.msra.mxu1 %v426_v15 }
  0xd6   :  { %v88_v20 = vpop.f32.mrb[0].mxu0 }
  0xd7   :  { %v89_v21 = vadd.f32 %v350_v19, %v88_v20  ;;  %v380_v22 = vpop.f32.mrb[1].mxu0 }
  0xd9   :  { %v92_v23 = vmax.f32 %v89_v21, 0.0 }
  0xdb   :  { %398 = vmatmul.mubr.msk.f32.vlgmr.msra.gmra.mrb[0].mxu1 %vm106_vm2, %v92_v23 }
 0x1ae   :  { %v176_v28 = vpop.f32.mrb[0].mxu1 }
 0x1af   :  { %v177_v29 = vadd.f32 %v352_v27, %v176_v28  ;;  %v399_v30 = vpop.f32.mrb[1].mxu1 }
 0x1b1   :  { %v180_v31 = vmax.f32 %v177_v29, 0.0 }
 0x1b3   :  { %409 = vmatmul.mubr.msk.f32.vlgmr.msra.gmra.mrb[2].mxu0 %vm190_vm3, %v180_v31 }
 0x1b4   :  { %413 = vmatprep.mubr.msk.f32.mxu0 %vm438_vm1, %v437_v0  ;;  %412 = vmatpush3.msra.mxu0 %v265_v32 }
 0x286   :  { %v260_v34 = vpop.f32.mrb[2].mxu0 }
 0x287   :  { %v261_v35 = vadd.f32 %v354_v33, %v260_v34  ;;  %v410_v36 = vpop.f32.mrb[3].mxu0 }
 0x289   :  { %v264_v37 = vmax.f32 %v261_v35, 0.0 }
 0x28b   :  { %414 = vmatmul.mubr.msk.f32.vlgmr.msra.gmra.mrb[4].mxu0 %vm18_vm0, %v264_v37 }
 0x35e   :  { %v340_v39 = vpop.f32.mrb[4].mxu0 }
 0x35f   :  { %v341_v40 = vadd.f32 %v356_v38, %v340_v39  ;;  %v415_v41 = vpop.f32.mrb[5].mxu0 }
 0x361   :  { %345 = vst.msk [vmem:[%s523_s2] sm:$0xff] %vm344_vm4, %v341_v40 }

</bundles_post_ra>
